<compile_context>
chip_gen: v7x
topology: tpu7x:2x2x1
jax: 0.10.0
libtpu: 0.0.40
codegen_flags: <defaults>
</compile_context>

<pallas_src>
import functools

import jax
import jax.numpy as jnp
from jax.experimental import pallas as pl
from jax.experimental.pallas import tpu as pltpu

_LANE = 128
_FUSED_MAX_BYTES = 12 * 1024 * 1024  # in + out + f32 headroom for the fast path


def _tpu_budgets():
    """Generation-aware (vmem_limit_bytes, per-block f32 working-set budget)."""
    try:
        vmem_bytes = int(pltpu.get_tpu_info().vmem_capacity_bytes)
    except Exception:  # interpret mode / unknown chip -> conservative defaults
        vmem_bytes = 64 * 1024 * 1024
    if vmem_bytes >= 100 * 1024 * 1024:      # v5e / v6e: 128 MiB physical VMEM
        return 80 * 1024 * 1024, 6 * 1024 * 1024
    else:                                    # v7x: 64 MiB physical VMEM
        return 40 * 1024 * 1024, 6 * 1024 * 1024


# ----------------------------- kernels --------------------------------------

def _fused_center_kernel(x_ref, o_ref, *, inv_total):
    """Single-block path: mean + subtract in one body (x read once)."""
    x = x_ref[...]
    xf = x.astype(jnp.float32)
    mean = jnp.sum(xf, keepdims=True) * inv_total          # (1, 1) f32
    if o_ref.dtype == jnp.float32:
        o_ref[...] = xf - mean
    else:
        # Keep the wide elementwise work in the packed input dtype; the mean
        # was accumulated in f32, only the scalar is cast (bf16: ~1 ulp diff).
        o_ref[...] = (x - mean.astype(x.dtype)).astype(o_ref.dtype)


def _partial_mean_kernel(x_ref, mean_ref, acc_ref, *, inv_total):
    """Pass 1: f32 partial sums into a (1, cols) accumulator; emit the mean."""
    @pl.when(pl.program_id(0) == 0)
    def _init():
        acc_ref[...] = jnp.zeros_like(acc_ref)

    # Hot loop: per-block cross-sublane reduce (XLU slot) + VPU add.
    acc_ref[...] += jnp.sum(x_ref[...].astype(jnp.float32), axis=0,
                            keepdims=True)

    @pl.when(pl.program_id(0) == pl.num_programs(0) - 1)
    def _finalize():
        # Single cross-lane reduce; fold 1/N so pass 1 emits the mean directly.
        mean_ref[...] = jnp.sum(acc_ref[...], keepdims=True) * inv_total


def _subtract_kernel(mean_ref, x_ref, o_ref):
    """Pass 2: o = x - mean; mean is an f32 scalar living in SMEM."""
    mean = mean_ref[0, 0]                                   # sreg -> free splat
    x = x_ref[...]
    if o_ref.dtype == jnp.float32:
        o_ref[...] = x - mean
    else:
        o_ref[...] = (x - mean.astype(o_ref.dtype)).astype(o_ref.dtype)


# ----------------------------- wrapper ---------------------------------------

def _row_unit(dtype):
    # Packed sublane granularity: 8 for 32-bit, 16 for bf16, 32 for int8.
    return max(8, 32 // max(jnp.dtype(dtype).itemsize, 1))


def _fused_slab_shape(total):
    """Pick a lane-dense (rows, cols) factorization for the fused path."""
    for c in (512, 256, 128):
        if total % c == 0 and total // c >= 8:
            return total // c, c
    for c in (512, 256, 128):
        if total % c == 0:
            return total // c, c
    return 1, total  # full-array block is always legal; tiny inputs only


def centered_layer(x):
    """x - x.mean(); semantics identical to the PyTorch module (float inputs)."""
    orig_shape, orig_dtype = x.shape, x.dtype
    total = int(x.size)
    itemsize = jnp.dtype(orig_dtype).itemsize
    inv_total = 1.0 / total

    vmem_limit, block_budget = _tpu_budgets()

    # ---- fast path: whole slab fits in VMEM -> one fused kernel, no grid ----
    if total * (2 * itemsize + 4) <= _FUSED_MAX_BYTES:
        rows, cols = _fused_slab_shape(total)
        out2d = pl.pallas_call(
            functools.partial(_fused_center_kernel, inv_total=inv_total),
            out_shape=jax.ShapeDtypeStruct((rows, cols), orig_dtype),
            compiler_params=pltpu.CompilerParams(vmem_limit_bytes=vmem_limit),
        )(x.reshape(rows, cols))
        return out2d.reshape(orig_shape)

    # ---- large path: tiled two-pass (reduce, then subtract) ----
    row_unit = _row_unit(orig_dtype)
    cols = 4 * _LANE                              # lane-dense 512-wide slab
    rows0 = pl.cdiv(total, cols)
    rows0 = pl.cdiv(rows0, row_unit) * row_unit

    # Budget-first tile rows (~block_budget f32 working set), rows padded up
    # to a multiple of tr -> no collapse to tiny tiles on awkward row counts.
    budget_rows = max(row_unit, block_budget // (cols * 4))
    budget_rows -= budget_rows % row_unit
    tr = min(budget_rows, rows0)
    nb = pl.cdiv(rows0, tr)
    rows = nb * tr
    padded = rows * cols

    flat = x.reshape(-1)
    if padded != total:
        # TODO(synk): handle the ragged tail as a masked last block in-kernel
        # instead of materializing a padded copy (extra HBM read+write of x).
        flat = jnp.pad(flat, (0, padded - total))   # zeros don't change the sum
    x2d = flat.reshape(rows, cols)

    # Pass 1: global f32 mean (reduction axis -> "arbitrary").
    # TODO(synk): on v7x, split this reduction across both TensorCores
    # (leading core-parallel grid axis + (2,1) partial sums).
    mean = pl.pallas_call(
        functools.partial(_partial_mean_kernel, inv_total=inv_total),
        out_shape=jax.ShapeDtypeStruct((1, 1), jnp.float32),
        grid_spec=pltpu.PrefetchScalarGridSpec(
            num_scalar_prefetch=0,
            grid=(nb,),
            in_specs=[pl.BlockSpec((tr, cols), lambda i: (i, 0))],
            out_specs=pl.BlockSpec((1, 1), lambda i: (0, 0)),
            scratch_shapes=[pltpu.VMEM((1, cols), jnp.float32)],
        ),
        compiler_params=pltpu.CompilerParams(
            dimension_semantics=("arbitrary",),
            vmem_limit_bytes=vmem_limit,
        ),
        cost_estimate=pl.CostEstimate(
            flops=padded, transcendentals=0,
            bytes_accessed=padded * itemsize + 4),
    )(x2d)

    # Pass 2: o = x - mean (independent rows -> "parallel"; mean lives in SMEM).
    out2d = pl.pallas_call(
        _subtract_kernel,
        out_shape=jax.ShapeDtypeStruct((rows, cols), orig_dtype),
        grid_spec=pltpu.PrefetchScalarGridSpec(
            num_scalar_prefetch=0,
            grid=(nb,),
            in_specs=[pl.BlockSpec(memory_space=pltpu.MemorySpace.SMEM),
                      pl.BlockSpec((tr, cols), lambda i: (i, 0))],
            out_specs=pl.BlockSpec((tr, cols), lambda i: (i, 0)),
        ),
        compiler_params=pltpu.CompilerParams(
            dimension_semantics=("parallel",),
            vmem_limit_bytes=vmem_limit,
        ),
        cost_estimate=pl.CostEstimate(
            flops=padded, transcendentals=0,
            bytes_accessed=2 * padded * itemsize + 4),
    )(mean, x2d)

    out = out2d.reshape(-1)
    if padded != total:
        out = out[:total]
    return out.reshape(orig_shape)


if __name__ == "__main__":
    key = jax.random.PRNGKey(0)
    # small NCHW input, matching typical usage of the module
    x = jax.random.normal(key, (2, 4, 16, 16), dtype=jnp.float32)

    out = jax.block_until_ready(centered_layer(x))

    # correctness check against plain JAX reference
    ref = x - jnp.mean(x)
    assert out.shape == x.shape and out.dtype == x.dtype
    assert jnp.allclose(out, ref, atol=1e-5, rtol=1e-5), "mismatch vs reference"
    # centered output should have ~zero mean
    assert abs(float(jnp.mean(out))) < 1e-4

    print("KERNEL_OK")
</pallas_src>

<mosaic_0001>
module attributes {stable_mosaic.version = 11 : i64} {
  func.func @_fused_center_kernel(%arg0: memref<8x256xf32, #tpu.memory_space<vmem>>, %arg1: memref<8x256xf32, #tpu.memory_space<vmem>>) attributes {dimension_semantics = [], scalar_prefetch = 0 : i64, scratch_operands = 0 : i64, tpu.core_type = #tpu.core_type<tc>} {
    %c0 = arith.constant 0 : index
    %c0_0 = arith.constant 0 : index
    %0 = vector.load %arg0[%c0, %c0_0] : memref<8x256xf32, #tpu.memory_space<vmem>>, vector<8x256xf32>
    %1 = vector.shape_cast %0 : vector<8x256xf32> to vector<1x8x256xf32>
    %cst = arith.constant dense<0.000000e+00> : vector<1xf32>
    %2 = vector.multi_reduction <add>, %1, %cst [1, 2] : vector<1x8x256xf32> to vector<1xf32>
    %3 = vector.shape_cast %2 : vector<1xf32> to vector<1x1x1xf32>
    %4 = vector.extract %3[0, 0, 0] : f32 from vector<1x1x1xf32>
    %5 = vector.broadcast %4 : f32 to vector<1x1xf32>
    %cst_1 = arith.constant 4.8828125E-4 : f32
    %6 = vector.broadcast %cst_1 : f32 to vector<1x1xf32>
    %7 = arith.mulf %5, %6 : vector<1x1xf32>
    %8 = vector.broadcast %7 : vector<1x1xf32> to vector<8x256xf32>
    %9 = arith.subf %0, %8 : vector<8x256xf32>
    %c0_2 = arith.constant 0 : index
    %c0_3 = arith.constant 0 : index
    %10 = vector.load %arg1[%c0_2, %c0_3] : memref<8x256xf32, #tpu.memory_space<vmem>>, vector<8x256xf32>
    tpu.vector_store %arg1[%c0_2, %c0_3], %9 {strides = array<i32>} : memref<8x256xf32, #tpu.memory_space<vmem>>, vector<8x256xf32>,
    return
  }
}

</mosaic_0001>

<bundles_post_ra>
// kernel: tpu_custom_call.1
= control target key start
LH: loop header
LB: loop body
LE: loop exit
PB: predicated region body
PF: predicated region fallthrough
CT: control target
= control target key end

     0   :  { %6 = vsyncpa [#allocation3], 0  ;;  %s142_s0 = inlined_call_operand.hbm [shape: f32[8,256], index: 0, kind: input, shape index: {}]   ;;  %s143_s1 = inlined_call_operand.hbm [shape: f32[8,256], index: 1, kind: output, shape index: {}]  }
   0x1   :  { %7 = vsyncpa [#allocation4], 0  ;;  %s106_s6 = smov [#allocation2]   ;;  %s58_s10 = scalar_lea.hbm %s142_s0, 256 }
   0x2   :  { %s14_s7 = sshll.u32 %s106_s6, 4  ;;  %p59_p0 = scmp.ne.s32.totalorder %s142_s0, %s58_s10  ;;  %s15_s7 = int_to_ptr.vmem [resolvable:$true] %s14_s7 }
   0x3   :  { %p62_p1 = scmp.lt.u32.totalorder %s58_s10, %s142_s0 }
   0x5   :  { %p64_p2 = pnand %p62_p1, %p59_p0 }
   0x7   :  { %67 = shalt.err (!%p64_p2)
}
   0x8   :  { %s68_s15 = scalar_lea.vmem %s15_s7, 256  ;;  %p73_p4 = scmp.lt.s32.totalorder %s15_s7, %s15_s7 }
   0x9   :  { %p69_p3 = scmp.ne.s32.totalorder %s15_s7, %s68_s15  ;;  %p74_p5 = scmp.lt.s32.totalorder %s68_s15, %s68_s15 }
   0xb   :  { %p75_p6 = por %p74_p5, %p73_p4 }
   0xd   :  { %p76_p7 = pnand %p75_p6, %p69_p3 }
   0xf   :  { %79 = shalt.err (!%p76_p7)
}
  0x10   :  { %17 = dma.hbm_to_vmem [thread:$0]  %s142_s0, 256, %s15_s7, [#allocation3]  }
  0x11   :  { %102 = dma.done.wait [#allocation3], 256  }
  0x12   :  { %103 = vsyncadd [#allocation3], 4294967040  ;;  %v21_v0 = vld [vmem:[#allocation2] sm:$0xff]  ;;  %v22_v1 = vld [vmem:[#allocation2 + $0x8] sm:$0xff]  ;;  %s107_s19 = smov [#allocation5]  }
  0x13   :  { %v23_v2 = vadd.f32 %v22_v1, %v21_v0  ;;  %s45_s20 = sshll.u32 %s107_s19, 4  ;;  %s46_s20 = int_to_ptr.vmem [resolvable:$true] %s45_s20 }
  0x14   :  { %s80_s0 = scalar_lea.vmem %s46_s20, 256  ;;  %p85_p9 = scmp.lt.s32.totalorder %s46_s20, %s46_s20 }
  0x15   :  { %24 = vadd.xlane.f32.xlu0 %v23_v2  ;;  %p81_p8 = scmp.ne.s32.totalorder %s46_s20, %s80_s0  ;;  %p86_p10 = scmp.lt.s32.totalorder %s80_s0, %s80_s0 }
  0x17   :  { %p87_p11 = por %p86_p10, %p85_p9 }
  0x19   :  { %p88_p12 = pnand %p87_p11, %p81_p8 }
  0xa2   :  { %v25_v3 = vpop.xlane.xlu0 %24 }
  0xa3   :  { %v26_v4 = vrot.slane %v25_v3, 4 }
  0xa5   :  { %v27_v5 = vadd.f32 %v26_v4, %v25_v3 }
  0xa7   :  { %v28_v6 = vrot.slane %v27_v5, 2 }
  0xa9   :  { %v29_v7 = vadd.f32 %v28_v6, %v27_v5 }
  0xab   :  { %v30_v8 = vrot.slane %v29_v7, 1 }
  0xad   :  { %v31_v9 = vadd.f32 %v30_v8, %v29_v7 }
  0xaf   :  { %54 = vpush %v31_v9 }
  0xe0   :  { %s55_s18 = spop %54 }
  0xe1   :  { %v33_v10 = vstv %s55_s18 }
  0xe2   :  { %v34_v11 = vmul.f32 0.00048828125, %v33_v10 }
  0xe4   :  { %v35_v12 = vsub.f32 %v21_v0, %v34_v11  ;;  %v36_v13 = vsub.f32 %v22_v1, %v34_v11 }
  0xe6   :  { %37 = vst [vmem:[#allocation5] sm:$0xff] %v35_v12  ;;  %38 = vst [vmem:[#allocation5 + $0x8] sm:$0xff] %v36_v13 }
  0xe7   :  { %91 = shalt.err (!%p88_p12)
}
  0xe8   :  { %s92_s23 = scalar_lea.hbm %s143_s1, 256 }
  0xe9   :  { %p93_p13 = scmp.ne.s32.totalorder %s143_s1, %s92_s23  ;;  %p96_p0 = scmp.lt.u32.totalorder %s92_s23, %s143_s1 }
  0xeb   :  { %p98_p1 = pnand %p96_p0, %p93_p13 }
  0xed   :  { %101 = shalt.err (!%p98_p1)
}
  0xee   :  { %48 = dma.vmem_to_hbm [thread:$0]  %s46_s20, 256, %s143_s1, [#allocation4]  }
  0xef   :  { %104 = dma.done.wait [#allocation4], 256  }
  0xf0   :  { %105 = vsyncadd [#allocation4], 4294967040 }
  0xf1   :  { %52 = vsyncpa [#allocation3], 1 }
  0xf2   :  { %53 = vsyncpa [#allocation4], 1 }

</bundles_post_ra>
